<compile_context>
chip_gen: v7x
topology: tpu7x:2x2x1
jax: 0.10.0
libtpu: 0.0.40
codegen_flags: <defaults>
</compile_context>

<pallas_src>
import functools
import math

import jax
import jax.numpy as jnp
from jax.experimental import pallas as pl
from jax.experimental.pallas import tpu as pltpu

_LN_EPS = 1e-5  # nn.LayerNorm default


def _round_up(x, m):
    return ((x + m - 1) // m) * m


@functools.lru_cache(maxsize=None)
def _vmem_cap_bytes():
    try:
        return int(pltpu.get_tpu_info().vmem_capacity_bytes)
    except Exception:
        return 64 * 1024 * 1024  # safe fallback on every generation


def _vmem_limit_bytes(estimate_bytes):
    # 2x headroom over the static tile estimate, capped at ~90% of this
    # generation's physical VMEM (~115 MiB on v5e/v6e, ~57 MiB on v7x).
    cap = int(0.9 * _vmem_cap_bytes())
    return int(min(max(2 * estimate_bytes, 32 * 1024 * 1024), cap))


def _resident_spec(block_shape, index_map):
    """Single-buffered BlockSpec for blocks whose index_map is grid-invariant."""
    try:
        return pl.BlockSpec(block_shape, index_map, pipeline_mode=pl.Buffered(1))
    except TypeError:  # older jax without pipeline_mode on BlockSpec
        return pl.BlockSpec(block_shape, index_map)


def _layernorm(x, gamma, beta):
    mu = jnp.mean(x, axis=-1, keepdims=True)
    var = jnp.mean((x - mu) ** 2, axis=-1, keepdims=True)
    return (x - mu) * jax.lax.rsqrt(var + _LN_EPS) * gamma + beta


# ---------------------------------------------------------------------------
# Attention sublayer: out = x + Wo(MHA(LN1(x)))        (dropouts = identity)
# ---------------------------------------------------------------------------
def _attn_kernel(x_ref, g1_ref, b1_ref, wqkv_ref, wo_ref, bo_ref, o_ref, *,
                 n_head, d_head, masked, scale):
    x = x_ref[0].astype(jnp.float32)                       # (T, E)
    T, E = x.shape
    xn = _layernorm(x, g1_ref[...], b1_ref[...])
    # Fused QKV projection: one lane-dense (T, 3E) bf16 MXU matmul, f32 acc.
    qkv = jnp.dot(xn.astype(jnp.bfloat16), wqkv_ref[...],
                  preferred_element_type=jnp.float32)      # (T, 3E) f32
    qkvb = qkv.astype(jnp.bfloat16)

    def to_heads(m):                                       # (T, E) -> (H, T, D)
        return m.reshape(T, n_head, d_head).transpose(1, 0, 2)

    q = to_heads(qkvb[:, :E])
    k = to_heads(qkvb[:, E:2 * E])
    v = to_heads(qkvb[:, 2 * E:])

    # Head-batched scores: one 3-D MXU einsum instead of n_head tiny matmuls.
    s = jnp.einsum("hqd,hkd->hqk", q, k,
                   preferred_element_type=jnp.float32) * scale   # (H, T, T)
    if masked:
        # Iota pair computed once (not per head); large finite negative avoids
        # any -inf/NaN hazard while still giving exp(.) == 0 after underflow.
        row = jax.lax.broadcasted_iota(jnp.int32, (T, T), 0)
        col = jax.lax.broadcasted_iota(jnp.int32, (T, T), 1)
        s = jnp.where((col <= row)[None, :, :], s, -1e30)
    s = s - jnp.max(s, axis=-1, keepdims=True)
    p = jnp.exp(s)
    p = p * pl.reciprocal(jnp.sum(p, axis=-1, keepdims=True), approx=True)
    # dropout_attn: eval-mode identity
    y = jnp.einsum("hqk,hkd->hqd", p.astype(jnp.bfloat16), v,
                   preferred_element_type=jnp.float32)     # (H, T, D)
    y = y.transpose(1, 0, 2).reshape(T, E)                 # head-major (T, E)
    y = jnp.dot(y.astype(jnp.bfloat16), wo_ref[...],
                preferred_element_type=jnp.float32) + bo_ref[...]
    # dropout_resid: eval-mode identity
    o_ref[0] = (x + y).astype(o_ref.dtype)


def attention_sublayer(x, ln1_g, ln1_b, wqkv, wo, bo, *, n_head,
                       masked_attention=False):
    B, T, E = x.shape
    assert E % n_head == 0
    d_head = E // n_head

    kernel = functools.partial(
        _attn_kernel, n_head=n_head, d_head=d_head,
        masked=masked_attention, scale=1.0 / math.sqrt(d_head))

    # Static per-step VMEM estimate (bytes): includes scores/probs and masks.
    est = (2 * 4 * 2 * T * E              # x in + out (f32, double buffered)
           + 2 * (3 * E * E + E * E)      # wqkv + wo (bf16, single buffered)
           + 4 * 8 * E                    # ln1 params + bo
           + 4 * 3 * T * E                # qkv (f32)
           + 2 * 6 * T * E                # q/k/v bf16 + relayout copies
           + 4 * 2 * n_head * T * T       # scores + probs (f32)
           + 4 * 2 * T * T                # causal iota masks
           + 4 * 4 * T * E)               # head outputs / misc temps

    return pl.pallas_call(
        kernel,
        out_shape=jax.ShapeDtypeStruct((B, T, E), x.dtype),
        grid_spec=pltpu.PrefetchScalarGridSpec(
            num_scalar_prefetch=0,
            grid=(B,),
            in_specs=[
                pl.BlockSpec((1, T, E), lambda b: (b, 0, 0)),     # x (per batch)
                _resident_spec((1, E), lambda b: (0, 0)),         # ln1 gamma
                _resident_spec((1, E), lambda b: (0, 0)),         # ln1 beta
                _resident_spec((E, 3 * E), lambda b: (0, 0)),     # wqkv (bf16, resident)
                _resident_spec((E, E), lambda b: (0, 0)),         # wo   (bf16, resident)
                _resident_spec((1, E), lambda b: (0, 0)),         # bo
            ],
            out_specs=pl.BlockSpec((1, T, E), lambda b: (b, 0, 0)),
        ),
        compiler_params=pltpu.CompilerParams(
            dimension_semantics=("parallel",),
            vmem_limit_bytes=_vmem_limit_bytes(est),
        ),
    )(x, ln1_g.reshape(1, E), ln1_b.reshape(1, E),
      wqkv.astype(jnp.bfloat16), wo.astype(jnp.bfloat16), bo.reshape(1, E))


# ---------------------------------------------------------------------------
# MLP sublayer: out = x + W2(GELU(W1(LN2(x)) + b1)) + b2   (dropout = identity)
# ---------------------------------------------------------------------------
def _mlp_kernel(x_ref, g2_ref, b2ln_ref, w1_ref, b1_ref, w2_ref, b2_ref,
                o_ref, xn_ref, acc_ref):
    k = pl.program_id(1)

    @pl.when(k == 0)
    def _():
        # LN2 once per row tile (f32 math), cached in bf16 for the MXU.
        x = x_ref[...].astype(jnp.float32)
        xn_ref[...] = _layernorm(x, g2_ref[...], b2ln_ref[...]).astype(xn_ref.dtype)

    # One d_mlp slab: bias + exact (erf) GELU fused so the hidden activation
    # never materializes at full (tm, d_mlp) width.
    h = jnp.dot(xn_ref[...], w1_ref[...],
                preferred_element_type=jnp.float32) + b1_ref[...]
    h = jax.nn.gelu(h, approximate=False)          # matches nn.GELU() default
    part = jnp.dot(h.astype(jnp.bfloat16), w2_ref[...],
                   preferred_element_type=jnp.float32)

    @pl.when(k == 0)
    def _():
        acc_ref[...] = part                        # init with first slab (no zero-fill)

    @pl.when(k != 0)
    def _():
        acc_ref[...] += part

    @pl.when(k == pl.num_programs(1) - 1)
    def _():
        # dropout: eval-mode identity; residual add + output bias fused here.
        o_ref[...] = (x_ref[...].astype(jnp.float32) + acc_ref[...]
                      + b2_ref[...]).astype(o_ref.dtype)


def _pick_tk(d_mlp, tk_req):
    """Largest 128-multiple divisor of d_mlp <= tk_req; otherwise a 128-multiple
    slab width (caller zero-pads the hidden dim up to a multiple of it)."""
    tk_req = max(128, min(int(tk_req), max(d_mlp, 128)))
    tk_req -= tk_req % 128
    for cand in range(tk_req, 0, -128):
        if d_mlp % cand == 0:
            return cand
    return tk_req


def mlp_sublayer(x, ln2_g, ln2_b, w1, b1, w2, b2, *, tm=None, tk=None):
    B, T, E = x.shape
    d_mlp = w1.shape[1]
    M = B * T
    x2d = x.reshape(M, E)

    # Row tiling: bigger tiles on 128-MiB-VMEM parts (v5e/v6e); 256 fits v7x.
    if tm is None:
        tm = 512 if _vmem_cap_bytes() >= (96 << 20) else 256
    tm = _round_up(max(8, min(tm, M)), 8)
    n_rows = pl.cdiv(M, tm)
    Mp = n_rows * tm
    if Mp != M:
        x2d = jnp.pad(x2d, ((0, Mp - M), (0, 0)))

    # Hidden-dim reduction tiling: bf16 weight slabs stream through VMEM.
    tk = _pick_tk(d_mlp, 512 if tk is None else tk)
    d_mlp_p = _round_up(d_mlp, tk)
    w1b = w1.astype(jnp.bfloat16)
    w2b = w2.astype(jnp.bfloat16)
    b1p = b1
    if d_mlp_p != d_mlp:
        pad = d_mlp_p - d_mlp
        w1b = jnp.pad(w1b, ((0, 0), (0, pad)))
        b1p = jnp.pad(b1, ((0, pad),))
        w2b = jnp.pad(w2b, ((0, pad), (0, 0)))
    nk = d_mlp_p // tk

    est = (4 * 2 * 2 * tm * E          # x in + out (f32, double buffered)
           + 2 * 2 * E * tk            # w1 slab (bf16, double buffered)
           + 2 * 2 * tk * E            # w2 slab (bf16, double buffered)
           + 4 * (2 * tk + 6 * E)      # biases + ln params
           + 2 * tm * E + 4 * tm * E   # xn (bf16) + acc (f32) scratch
           + 4 * 2 * tm * tk)          # hidden slab working set (generous)

    out = pl.pallas_call(
        _mlp_kernel,
        out_shape=jax.ShapeDtypeStruct((Mp, E), x.dtype),
        grid_spec=pltpu.PrefetchScalarGridSpec(
            num_scalar_prefetch=0,
            grid=(n_rows, nk),
            in_specs=[
                pl.BlockSpec((tm, E), lambda i, k: (i, 0)),       # x row tile
                _resident_spec((1, E), lambda i, k: (0, 0)),      # ln2 gamma
                _resident_spec((1, E), lambda i, k: (0, 0)),      # ln2 beta
                pl.BlockSpec((E, tk), lambda i, k: (0, k)),       # w1 slab (bf16)
                pl.BlockSpec((1, tk), lambda i, k: (0, k)),       # b1 slab
                pl.BlockSpec((tk, E), lambda i, k: (k, 0)),       # w2 slab (bf16)
                _resident_spec((1, E), lambda i, k: (0, 0)),      # b2
            ],
            out_specs=pl.BlockSpec((tm, E), lambda i, k: (i, 0)),
            scratch_shapes=[
                pltpu.VMEM((tm, E), jnp.bfloat16),  # LN2(x), cached across k
                pltpu.VMEM((tm, E), jnp.float32),   # f32 accumulator
            ],
        ),
        compiler_params=pltpu.CompilerParams(
            dimension_semantics=("parallel", "arbitrary"),
            vmem_limit_bytes=_vmem_limit_bytes(est),
        ),
    )(x2d, ln2_g.reshape(1, E), ln2_b.reshape(1, E), w1b,
      b1p.reshape(1, d_mlp_p), w2b, b2.reshape(1, E))
    return out[:M].reshape(B, T, E)


# ---------------------------------------------------------------------------
# Full TransformerBlock forward
# ---------------------------------------------------------------------------
def transformer_block(x, p, *, n_head, masked_attention=False, tm=None, tk=None):
    x = attention_sublayer(x, p["ln1_g"], p["ln1_b"], p["wqkv"], p["wo"], p["bo"],
                           n_head=n_head, masked_attention=masked_attention)
    x = mlp_sublayer(x, p["ln2_g"], p["ln2_b"], p["w1"], p["b1"], p["w2"], p["b2"],
                     tm=tm, tk=tk)
    return x


def init_params(key, d_emb, d_mlp, dtype=jnp.float32):
    """Mimics nn.Linear uniform(-1/sqrt(fan_in), 1/sqrt(fan_in)); weights [in, out]."""
    ks = jax.random.split(key, 11)
    lim_e = 1.0 / math.sqrt(d_emb)
    lim_m = 1.0 / math.sqrt(d_mlp)
    u = lambda k, shape, lim: jax.random.uniform(k, shape, dtype, -lim, lim)
    return {
        "ln1_g": 1.0 + 0.1 * jax.random.normal(ks[0], (d_emb,), dtype),
        "ln1_b": 0.1 * jax.random.normal(ks[1], (d_emb,), dtype),
        "wqkv": u(ks[2], (d_emb, 3 * d_emb), lim_e),   # bias=False in the module
        "wo":   u(ks[3], (d_emb, d_emb), lim_e),
        "bo":   u(ks[4], (d_emb,), lim_e),
        "ln2_g": 1.0 + 0.1 * jax.random.normal(ks[5], (d_emb,), dtype),
        "ln2_b": 0.1 * jax.random.normal(ks[6], (d_emb,), dtype),
        "w1":   u(ks[7], (d_emb, d_mlp), lim_e),
        "b1":   u(ks[8], (d_mlp,), lim_e),
        "w2":   u(ks[9], (d_mlp, d_emb), lim_m),
        "b2":   u(ks[10], (d_emb,), lim_m),
    }


def transformer_block_ref(x, p, *, n_head, masked_attention=False):
    """Pure-JAX reference (high-precision f32 matmuls) of the PyTorch forward."""
    B, T, E = x.shape
    d_head = E // n_head
    hp = jax.lax.Precision.HIGHEST

    xn = _layernorm(x, p["ln1_g"], p["ln1_b"])
    qkv = jnp.einsum("bte,ef->btf", xn, p["wqkv"], precision=hp)
    q, k, v = jnp.split(qkv, 3, axis=-1)
    to_heads = lambda t: t.reshape(B, T, n_head, d_head).transpose(0, 2, 1, 3)
    q, k, v = to_heads(q), to_heads(k), to_heads(v)
    s = jnp.einsum("bhqd,bhkd->bhqk", q, k, precision=hp) / math.sqrt(d_head)
    if masked_attention:
        mask = jnp.tril(jnp.ones((T, T), dtype=bool))
        s = jnp.where(mask[None, None], s, -jnp.inf)
    s = s - s.max(axis=-1, keepdims=True)
    a = jax.nn.softmax(s, axis=-1)
    y = jnp.einsum("bhqk,bhkd->bhqd", a, v, precision=hp)
    y = y.transpose(0, 2, 1, 3).reshape(B, T, E)
    x = x + jnp.einsum("bte,ef->btf", y, p["wo"], precision=hp) + p["bo"]
    xn2 = _layernorm(x, p["ln2_g"], p["ln2_b"])
    h = jax.nn.gelu(jnp.einsum("bte,ef->btf", xn2, p["w1"], precision=hp) + p["b1"],
                    approximate=False)
    return x + jnp.einsum("btf,fe->bte", h, p["w2"], precision=hp) + p["b2"]


if __name__ == "__main__":
    # Small but lane-dense shapes: d_emb / d_mlp are multiples of 128 so output
    # tiles are unmasked full-lane stores and the MXU columns are fully used.
    B, T = 2, 8
    n_head, d_head = 4, 32
    d_emb = n_head * d_head        # 128
    d_mlp = 2 * d_emb              # 256
    # p_dropout = 0.1 in the module; dropout is identity in eval mode here.

    key = jax.random.PRNGKey(0)
    kx, kp = jax.random.split(key)
    x = jax.random.normal(kx, (B, T, d_emb), dtype=jnp.float32)
    params = init_params(kp, d_emb, d_mlp)

    # Two configs: defaults (single hidden slab) and (tm=8, tk=128) to exercise
    # the row grid and the multi-slab reduction/accumulation path.
    for masked, tm, tk in ((False, None, None), (True, 8, 128)):
        out = transformer_block(x, params, n_head=n_head,
                                masked_attention=masked, tm=tm, tk=tk)
        out = jax.block_until_ready(out)
        ref = transformer_block_ref(x, params, n_head=n_head,
                                    masked_attention=masked)
        assert out.shape == (B, T, d_emb)
        assert bool(jnp.all(jnp.isfinite(out)))
        max_diff = float(jnp.max(jnp.abs(out - ref)))
        # bf16 MXU operands (f32 accumulation) vs. f32-HIGHEST reference.
        assert jnp.allclose(out, ref, atol=5e-2, rtol=5e-2), (
            f"mismatch (masked={masked}): max|diff|={max_diff}")

    print("KERNEL_OK")
</pallas_src>

<mosaic_0001>
module attributes {stable_mosaic.version = 11 : i64} {
  func.func @_attn_kernel(%arg0: i32, %arg1: memref<1x8x128xf32, #tpu.memory_space<vmem>>, %arg2: memref<1x128xf32, #tpu.memory_space<vmem>>, %arg3: memref<1x128xf32, #tpu.memory_space<vmem>>, %arg4: memref<128x384xbf16, #tpu.memory_space<vmem>>, %arg5: memref<128x128xbf16, #tpu.memory_space<vmem>>, %arg6: memref<1x128xf32, #tpu.memory_space<vmem>>, %arg7: memref<1x8x128xf32, #tpu.memory_space<vmem>>) attributes {dimension_semantics = [#tpu.dimension_semantics<parallel>], iteration_bounds = array<i64: 2>, scalar_prefetch = 0 : i64, scratch_operands = 0 : i64, tpu.core_type = #tpu.core_type<tc>, window_params = [{transform_indices = @transform_0, window_bounds = array<i64: 1, 8, 128>}, {pipeline_mode = #tpu.pipeline_mode<synchronous>, transform_indices = @transform_1, window_bounds = array<i64: 1, 128>}, {pipeline_mode = #tpu.pipeline_mode<synchronous>, transform_indices = @transform_2, window_bounds = array<i64: 1, 128>}, {pipeline_mode = #tpu.pipeline_mode<synchronous>, transform_indices = @transform_3, window_bounds = array<i64: 128, 384>}, {pipeline_mode = #tpu.pipeline_mode<synchronous>, transform_indices = @transform_4, window_bounds = array<i64: 128, 128>}, {pipeline_mode = #tpu.pipeline_mode<synchronous>, transform_indices = @transform_5, window_bounds = array<i64: 1, 128>}, {transform_indices = @transform_6, window_bounds = array<i64: 1, 8, 128>}]} {
    %c0 = arith.constant 0 : index
    %c0_0 = arith.constant 0 : index
    %c0_1 = arith.constant 0 : index
    %0 = vector.load %arg1[%c0, %c0_0, %c0_1] : memref<1x8x128xf32, #tpu.memory_space<vmem>>, vector<1x8x128xf32>
    %1 = vector.shape_cast %0 : vector<1x8x128xf32> to vector<8x128xf32>
    %c0_2 = arith.constant 0 : index
    %c0_3 = arith.constant 0 : index
    %2 = vector.load %arg2[%c0_2, %c0_3] : memref<1x128xf32, #tpu.memory_space<vmem>>, vector<1x128xf32>
    %c0_4 = arith.constant 0 : index
    %c0_5 = arith.constant 0 : index
    %3 = vector.load %arg3[%c0_4, %c0_5] : memref<1x128xf32, #tpu.memory_space<vmem>>, vector<1x128xf32>
    %cst = arith.constant dense<0.000000e+00> : vector<8xf32>
    %4 = vector.multi_reduction <add>, %1, %cst [1] : vector<8x128xf32> to vector<8xf32>
    %5 = vector.shape_cast %4 : vector<8xf32> to vector<8x1xf32>
    %cst_6 = arith.constant 1.280000e+02 : f32
    %6 = vector.broadcast %cst_6 : f32 to vector<8x1xf32>
    %7 = arith.divf %5, %6 : vector<8x1xf32>
    %8 = vector.broadcast %7 : vector<8x1xf32> to vector<8x128xf32>
    %9 = arith.subf %1, %8 : vector<8x128xf32>
    %10 = arith.mulf %9, %9 : vector<8x128xf32>
    %cst_7 = arith.constant dense<0.000000e+00> : vector<8xf32>
    %11 = vector.multi_reduction <add>, %10, %cst_7 [1] : vector<8x128xf32> to vector<8xf32>
    %12 = vector.shape_cast %11 : vector<8xf32> to vector<8x1xf32>
    %cst_8 = arith.constant 1.280000e+02 : f32
    %13 = vector.broadcast %cst_8 : f32 to vector<8x1xf32>
    %14 = arith.divf %12, %13 : vector<8x1xf32>
    %15 = vector.broadcast %7 : vector<8x1xf32> to vector<8x128xf32>
    %16 = arith.subf %1, %15 : vector<8x128xf32>
    %cst_9 = arith.constant 9.99999974E-6 : f32
    %17 = vector.broadcast %cst_9 : f32 to vector<8x1xf32>
    %18 = arith.addf %14, %17 : vector<8x1xf32>
    %19 = math.rsqrt %18 : vector<8x1xf32>
    %20 = vector.broadcast %19 : vector<8x1xf32> to vector<8x128xf32>
    %21 = arith.mulf %16, %20 : vector<8x128xf32>
    %22 = vector.broadcast %2 : vector<1x128xf32> to vector<8x128xf32>
    %23 = arith.mulf %21, %22 : vector<8x128xf32>
    %24 = vector.broadcast %3 : vector<1x128xf32> to vector<8x128xf32>
    %25 = arith.addf %23, %24 : vector<8x128xf32>
    %26 = arith.truncf %25 : vector<8x128xf32> to vector<8x128xbf16>
    %c0_10 = arith.constant 0 : index
    %c0_11 = arith.constant 0 : index
    %27 = vector.load %arg4[%c0_10, %c0_11] : memref<128x384xbf16, #tpu.memory_space<vmem>>, vector<128x384xbf16>
    %cst_12 = arith.constant dense<0.000000e+00> : vector<8x384xf32>
    %28 = tpu.matmul %26, %27, %cst_12 {dimension_numbers = #tpu.dot_dimension_numbers<[1], [0], [0], [1], [0, 0, 1, 1], [], []>} : vector<8x128xbf16>, vector<128x384xbf16>, vector<8x384xf32> -> vector<8x384xf32>
    %29 = arith.truncf %28 : vector<8x384xf32> to vector<8x384xbf16>
    %30 = vector.extract_strided_slice %29 {offsets = [0, 0], sizes = [8, 128], strides = [1, 1]} : vector<8x384xbf16> to vector<8x128xbf16>
    %31 = vector.shape_cast %30 : vector<8x128xbf16> to vector<8x4x32xbf16>
    %32 = tpu.transpose %31, [1, 0, 2] : vector<8x4x32xbf16> -> vector<4x8x32xbf16>
    %33 = vector.extract_strided_slice %29 {offsets = [0, 128], sizes = [8, 128], strides = [1, 1]} : vector<8x384xbf16> to vector<8x128xbf16>
    %34 = vector.shape_cast %33 : vector<8x128xbf16> to vector<8x4x32xbf16>
    %35 = tpu.transpose %34, [1, 0, 2] : vector<8x4x32xbf16> -> vector<4x8x32xbf16>
    %36 = vector.extract_strided_slice %29 {offsets = [0, 256], sizes = [8, 128], strides = [1, 1]} : vector<8x384xbf16> to vector<8x128xbf16>
    %37 = vector.shape_cast %36 : vector<8x128xbf16> to vector<8x4x32xbf16>
    %38 = tpu.transpose %37, [1, 0, 2] : vector<8x4x32xbf16> -> vector<4x8x32xbf16>
    "tpu.trace_start"() <{level = 10 : i32, message = "hqd,hkd->hqk"}> : () -> ()
    %cst_13 = arith.constant dense<0.000000e+00> : vector<4x8x8xf32>
    %39 = tpu.matmul %32, %35, %cst_13 {dimension_numbers = #tpu.dot_dimension_numbers<[2], [2], [1], [1], [0, 0, 0, 1, 1, 1], [0], [0]>} : vector<4x8x32xbf16>, vector<4x8x32xbf16>, vector<4x8x8xf32> -> vector<4x8x8xf32>
    "tpu.trace_stop"() : () -> ()
    %cst_14 = arith.constant 0.176776692 : f32
    %40 = vector.broadcast %cst_14 : f32 to vector<4x8x8xf32>
    %41 = arith.mulf %39, %40 : vector<4x8x8xf32>
    %cst_15 = arith.constant dense<0xFF800000> : vector<4x8xf32>
    %42 = vector.multi_reduction <maximumf>, %41, %cst_15 [2] : vector<4x8x8xf32> to vector<4x8xf32>
    %43 = vector.shape_cast %42 : vector<4x8xf32> to vector<4x8x1xf32>
    %44 = vector.broadcast %43 : vector<4x8x1xf32> to vector<4x8x8xf32>
    %45 = arith.subf %41, %44 : vector<4x8x8xf32>
    %46 = math.exp %45 : vector<4x8x8xf32>
    %cst_16 = arith.constant dense<0.000000e+00> : vector<4x8xf32>
    %47 = vector.multi_reduction <add>, %46, %cst_16 [2] : vector<4x8x8xf32> to vector<4x8xf32>
    %48 = vector.shape_cast %47 : vector<4x8xf32> to vector<4x8x1xf32>
    %49 = tpu.reciprocal %48 {approx = true} : vector<4x8x1xf32> -> vector<4x8x1xf32>
    %50 = vector.broadcast %49 : vector<4x8x1xf32> to vector<4x8x8xf32>
    %51 = arith.mulf %46, %50 : vector<4x8x8xf32>
    %52 = arith.truncf %51 : vector<4x8x8xf32> to vector<4x8x8xbf16>
    "tpu.trace_start"() <{level = 10 : i32, message = "hqk,hkd->hqd"}> : () -> ()
    %cst_17 = arith.constant dense<0.000000e+00> : vector<4x8x32xf32>
    %53 = tpu.matmul %52, %38, %cst_17 {dimension_numbers = #tpu.dot_dimension_numbers<[2], [1], [1], [2], [0, 0, 0, 1, 1, 2], [0], [0]>} : vector<4x8x8xbf16>, vector<4x8x32xbf16>, vector<4x8x32xf32> -> vector<4x8x32xf32>
    "tpu.trace_stop"() : () -> ()
    %54 = tpu.transpose %53, [1, 0, 2] : vector<4x8x32xf32> -> vector<8x4x32xf32>
    %55 = vector.shape_cast %54 : vector<8x4x32xf32> to vector<8x128xf32>
    %56 = arith.truncf %55 : vector<8x128xf32> to vector<8x128xbf16>
    %c0_18 = arith.constant 0 : index
    %c0_19 = arith.constant 0 : index
    %57 = vector.load %arg5[%c0_18, %c0_19] : memref<128x128xbf16, #tpu.memory_space<vmem>>, vector<128x128xbf16>
    %cst_20 = arith.constant dense<0.000000e+00> : vector<8x128xf32>
    %58 = tpu.matmul %56, %57, %cst_20 {dimension_numbers = #tpu.dot_dimension_numbers<[1], [0], [0], [1], [0, 0, 1, 1], [], []>} : vector<8x128xbf16>, vector<128x128xbf16>, vector<8x128xf32> -> vector<8x128xf32>
    %c0_21 = arith.constant 0 : index
    %c0_22 = arith.constant 0 : index
    %59 = vector.load %arg6[%c0_21, %c0_22] : memref<1x128xf32, #tpu.memory_space<vmem>>, vector<1x128xf32>
    %60 = vector.broadcast %59 : vector<1x128xf32> to vector<8x128xf32>
    %61 = arith.addf %58, %60 : vector<8x128xf32>
    %62 = arith.addf %1, %61 : vector<8x128xf32>
    %c0_23 = arith.constant 0 : index
    %c0_24 = arith.constant 0 : index
    %c0_25 = arith.constant 0 : index
    %63 = vector.load %arg7[%c0_23, %c0_24, %c0_25] : memref<1x8x128xf32, #tpu.memory_space<vmem>>, vector<1x8x128xf32>
    %64 = vector.shape_cast %63 : vector<1x8x128xf32> to vector<8x128xf32>
    %65 = vector.shape_cast %62 : vector<8x128xf32> to vector<1x8x128xf32>
    tpu.vector_store %arg7[%c0_23, %c0_24, %c0_25], %65 {strides = array<i32>} : memref<1x8x128xf32, #tpu.memory_space<vmem>>, vector<1x8x128xf32>,
    return
  }
  func.func @transform_0(%arg0: i32) -> (i32, i32, i32) {
    %c0_i32 = arith.constant 0 : i32
    %c0_i32_0 = arith.constant 0 : i32
    %c0_i32_1 = arith.constant 0 : i32
    return %arg0, %c0_i32, %c0_i32_0 : i32, i32, i32
  }
  func.func @transform_1(%arg0: i32) -> (i32, i32) {
    %c0_i32 = arith.constant 0 : i32
    %c0_i32_0 = arith.constant 0 : i32
    %c0_i32_1 = arith.constant 0 : i32
    return %c0_i32, %c0_i32_0 : i32, i32
  }
  func.func @transform_2(%arg0: i32) -> (i32, i32) {
    %c0_i32 = arith.constant 0 : i32
    %c0_i32_0 = arith.constant 0 : i32
    %c0_i32_1 = arith.constant 0 : i32
    return %c0_i32, %c0_i32_0 : i32, i32
  }
  func.func @transform_3(%arg0: i32) -> (i32, i32) {
    %c0_i32 = arith.constant 0 : i32
    %c0_i32_0 = arith.constant 0 : i32
    %c0_i32_1 = arith.constant 0 : i32
    return %c0_i32, %c0_i32_0 : i32, i32
  }
  func.func @transform_4(%arg0: i32) -> (i32, i32) {
    %c0_i32 = arith.constant 0 : i32
    %c0_i32_0 = arith.constant 0 : i32
    %c0_i32_1 = arith.constant 0 : i32
    return %c0_i32, %c0_i32_0 : i32, i32
  }
  func.func @transform_5(%arg0: i32) -> (i32, i32) {
    %c0_i32 = arith.constant 0 : i32
    %c0_i32_0 = arith.constant 0 : i32
    %c0_i32_1 = arith.constant 0 : i32
    return %c0_i32, %c0_i32_0 : i32, i32
  }
  func.func @transform_6(%arg0: i32) -> (i32, i32, i32) {
    %c0_i32 = arith.constant 0 : i32
    %c0_i32_0 = arith.constant 0 : i32
    %c0_i32_1 = arith.constant 0 : i32
    return %arg0, %c0_i32, %c0_i32_0 : i32, i32, i32
  }
}

</mosaic_0001>

<bundles_post_ra>
// kernel: tpu_custom_call.1
= control target key start
LH: loop header
LB: loop body
LE: loop exit
PB: predicated region body
PF: predicated region fallthrough
CT: control target
= control target key end

     0   :  { %11 = vsyncpa [#allocation3], 0  ;;  %s2826_s0 = inlined_call_operand.hbm [shape: f32[2,8,128], index: 0, kind: input, shape index: {}]   ;;  %s2827_s1 = inlined_call_operand.vmem [shape: f32[1,128], index: 1, kind: input, shape index: {}]   ;;  %s2828_s2 = inlined_call_operand.vmem [shape: f32[1,128], index: 2, kind: input, shape index: {}]   ;;  %s2829_s3 = inlined_call_operand.hbm [shape: bf16[128,384], index: 3, kind: input, shape index: {}]   ;;  %s2830_s4 = inlined_call_operand.hbm [shape: bf16[128,128], index: 4, kind: input, shape index: {}]   ;;  %s2831_s5 = inlined_call_operand.vmem [shape: f32[1,128], index: 5, kind: input, shape index: {}]   ;;  %s2832_s6 = inlined_call_operand.hbm [shape: f32[2,8,128], index: 6, kind: output, shape index: {}]  }
   0x1   :  { %13 = vsyncpa [#allocation3 + $0x1], 0 }
   0x2   :  { %14 = vsyncpa [#allocation6], 0 }
   0x3   :  { %15 = vsyncpa [#allocation4], 0 }
   0x4   :  { %17 = vsyncpa [#allocation4 + $0x1], 0  ;;  %s2398_s21 = smov 0   ;;  %s2400_s22 = smov 0  }
   0x5   :  { %s2402_s23 = smov 0   ;;  %s2404_s24 = smov 0  }
   0x6 LB: > { %s2419_s25 = sadd.s32 4294967295, %s2345_s24   ;;  %s1868_s26 = sadd.s32 4294967294, %s2345_s24   ;;  %s2345_s24 = sphi %s2404_s24, %s2852_s24   ;;  %s2341_s23 = sphi %s2402_s23, %s2851_s23   ;;  %s2337_s22 = sphi %s2400_s22, %s2850_s22   ;;  %s2333_s21 = sphi %s2398_s21, %s2849_s21  }
   0x7   : > { %p43_p0 = scmp.ne.s32.totalorder %s2337_s22, %s2333_s21  ;;  %p2833_p1 = scmp.eq.s32.totalorder %s2419_s25, 0 }
   0x8   : > { %p178_p3 = scmp.eq.s32.totalorder %s1868_s26, 1  ;;  %p1869_p5 = scmp.ge.s32.totalorder %s2345_s24, 1 }
   0x9   : > { %p2428_p4 = por %p2833_p1, %p43_p0  ;;  %p185_p7 = scmp.lt.s32.totalorder %s2345_s24, 3 }
   0xa   : > { %p2433_p6 = por %p178_p3, %p43_p0  ;;  %s2347_s30 = smov [#allocation5]  }
   0xb   : > { %s2836_s27 = scalar_select %p2428_p4, 1, 0 }
   0xc   : > { %s2837_s28 = scalar_select %p2433_p6, 1, 0 }
   0xd   : > { %p2438_p8 = pnand %p1869_p5, %p185_p7  ;;  %s203_s7 = sshll.u32 %s2347_s30, 4  ;;  %s2442_s7 = int_to_ptr.vmem [resolvable:$true] %s203_s7 }
   0xe   : > { %s2348_s9 = smov [#allocation7]   ;;  %s2189_s13 = scalar_lea.hbm %s2829_s3, 3072 }
   0xf   : > { %p2063_p9 = pneg %p2438_p8  ;;  %s216_s10 = sshll.u32 %s2348_s9, 4  ;;  %s2453_s10 = int_to_ptr.vmem [resolvable:$true] %s216_s10 }
  0x10   : > { %p2190_p12 = scmp.ne.s32.totalorder %s2829_s3, %s2189_s13  ;;  %p2196_p5 = scmp.lt.u32.totalorder %s2189_s13, %s2829_s3 }
  0x11   : > { %p2449_p11 = pnand %p2063_p9, %p2833_p1 }
  0x13   : > { %p2191_p13 = pneg %p2449_p11 }
  0x15   : > { %p2192_p0 = pnand %p2191_p13, %p2190_p12 }
  0x17   : > { %p2193_p3 = pneg %p2192_p0 }
  0x19   : > { %p2198_p7 = pnand %p2196_p5, %p2193_p3 }
  0x1b   : > { %2201 = shalt.err (!%p2198_p7)
}
  0x1c   : > { %s2202_s18 = scalar_lea.vmem %s2442_s7, 3072  ;;  %p2210_p2 = scmp.lt.s32.totalorder %s2442_s7, %s2442_s7 }
  0x1d   : > { %p2203_p9 = scmp.ne.s32.totalorder %s2442_s7, %s2202_s18  ;;  %p2211_p12 = scmp.lt.s32.totalorder %s2202_s18, %s2202_s18 }
  0x1f   : > { %p2205_p10 = pnand %p2203_p9, %p2191_p13  ;;  %p2212_p0 = por %p2211_p12, %p2210_p2 }
  0x21   : > { %p2206_p1 = pneg %p2205_p10 }
  0x23   : > { %p2213_p6 = pnand %p2212_p0, %p2206_p1 }
  0x25   : > { %2216 = shalt.err (!%p2213_p6)
}
  0x26   : > { %s2349_s19 = smov 192   ;;  %s2350_s20 = smov 12  }
  0x27   : > { %2066 = dma.hbm_to_vmem [thread:$0]  (!%p2449_p11), %s2829_s3, 3072, %s2442_s7, [#allocation6], %s2349_s19, %s2349_s19, %s2350_s20  }
  0x28   : > { %s2217_s12 = scalar_lea.hbm %s2830_s4, 1024 }
  0x29   : > { %p2218_p2 = scmp.ne.s32.totalorder %s2830_s4, %s2217_s12  ;;  %p2224_p10 = scmp.lt.u32.totalorder %s2217_s12, %s2830_s4 }
  0x2b   : > { %p2220_p1 = pnand %p2218_p2, %p2191_p13 }
  0x2d   : > { %p2221_p6 = pneg %p2220_p1 }
  0x2f   : > { %p2226_p3 = pnand %p2224_p10, %p2221_p6 }
  0x31   : > { %2229 = shalt.err (!%p2226_p3)
}
  0x32   : > { %s2230_s7 = scalar_lea.vmem %s2453_s10, 1024  ;;  %p2238_p12 = scmp.lt.s32.totalorder %s2453_s10, %s2453_s10 }
  0x33   : > { %p2231_p5 = scmp.ne.s32.totalorder %s2453_s10, %s2230_s7  ;;  %p2239_p0 = scmp.lt.s32.totalorder %s2230_s7, %s2230_s7 }
  0x35   : > { %p2233_p7 = pnand %p2231_p5, %p2191_p13  ;;  %p2240_p2 = por %p2239_p0, %p2238_p12 }
  0x37   : > { %p2234_p9 = pneg %p2233_p7 }
  0x39   : > { %p2241_p1 = pnand %p2240_p2, %p2234_p9 }
  0x3b   : > { %2244 = shalt.err (!%p2241_p1)
}
  0x3c   : > { %s2351_s17 = smov 64   ;;  %s2352_s18 = smov 4  }
  0x3d   : > { %2069 = dma.hbm_to_vmem [thread:$0]  (!%p2449_p11), %s2830_s4, 1024, %s2453_s10, [#allocation6], %s2351_s17, %s2351_s17, %s2352_s18  }
  0x3e   : > { %s2508_s26 = sadd.s32 1, %s2345_s24   ;;  %s30_s9 = sadd.s32 1, %s2341_s23 }
  0x3f   : > { %s27_s30 = ssub.s32 %s2345_s24, %s2508_s26  ;;  %p37_p6 = scmp.ne.s32.totalorder %s2341_s23, %s2337_s22 }
  0x40   : > { %p28_p13 = scmp.eq.s32.totalorder %s27_s30, 0  ;;  %p38_p10 = scmp.eq.s32.totalorder %s2345_s24, 0 }
  0x41   : > { %p2840_p5 = scmp.eq.s32.totalorder %s2419_s25, 1  ;;  %p2080_p9 = scmp.lt.s32.totalorder %s2345_s24, 2 }
  0x42   : > { %s2517_s11 = scalar_select %p28_p13, %s2341_s23, %s30_s9  }
  0x43   : > { %p39_p3 = por %p38_p10, %p37_p6  ;;  %p2521_p7 = por %p2840_p5, %p37_p6 }
  0x44   : > { %s233_s8 = sand.u32 1, %s2341_s23   ;;  %s1874_s10 = sshll.u32 %s2345_s24, 7 }
  0x45   : > { %s2841_s12 = scalar_select %p2521_p7, 1, 0 }
  0x46   : > { %s1873_s13 = sshll.u32 %s233_s8, 3  ;;  %s2531_s16 = scalar_lea.hbm %s2826_s0, %s1874_s10 }
  0x47   : > { %s237_s7 = scalar_lea.vmem [#allocation2], %s1873_s13  ;;  %p2535_p11 = pnand %p2080_p9, %p39_p3 }
  0x48   : > { %s244_s17 = sshll.u32 %s237_s7, 4  ;;  %s234_s19 = scalar_lea.sflag [#allocation3], %s233_s8  ;;  %s2533_s17 = int_to_ptr.vmem [resolvable:$true] %s244_s17 }
  0x49   : > { %s2245_s20 = scalar_lea.hbm %s2531_s16, 128  ;;  %p2247_p0 = pneg %p2535_p11 }
  0x4a   : > { %p2246_p12 = scmp.ne.s32.totalorder %s2531_s16, %s2245_s20  ;;  %s2250_s13 = scalar_lea.hbm %s2826_s0, 256 }
  0x4b   : > { %p2251_p13 = scmp.lt.u32.totalorder %s2531_s16, %s2826_s0  ;;  %p2252_p6 = scmp.lt.u32.totalorder %s2250_s13, %s2245_s20 }
  0x4c   : > { %p2248_p2 = pnand %p2247_p0, %p2246_p12  ;;  %p2254_p3 = scmp.lt.u32.totalorder %s2245_s20, %s2531_s16 }
  0x4d   : > { %p2253_p10 = por %p2252_p6, %p2251_p13 }
  0x4e   : > { %p2249_p1 = pneg %p2248_p2 }
  0x4f   : > { %p2255_p5 = por %p2254_p3, %p2253_p10 }
  0x51   : > { %p2256_p9 = pnand %p2255_p5, %p2249_p1 }
  0x53   : > { %2259 = shalt.err (!%p2256_p9)
}
  0x54   : > { %s2260_s8 = scalar_lea.vmem %s2533_s17, 128  ;;  %s2353_s15 = smov [#allocation2]  }
  0x55   : > { %p2261_p12 = scmp.ne.s32.totalorder %s2533_s17, %s2260_s8  ;;  %s2265_s7 = sshll.u32 %s2353_s15, 4  ;;  %s2266_s7 = int_to_ptr.vmem [resolvable:$false] %s2265_s7 }
  0x56   : > { %s2267_s30 = scalar_lea.vmem %s2266_s7, 256  ;;  %p2268_p4 = scmp.lt.s32.totalorder %s2533_s17, %s2266_s7 }
  0x57   : > { %p2263_p2 = pnand %p2261_p12, %p2247_p0  ;;  %p2269_p13 = scmp.lt.s32.totalorder %s2267_s30, %s2260_s8 }
  0x59   : > { %p2264_p7 = pneg %p2263_p2  ;;  %p2270_p6 = por %p2269_p13, %p2268_p4 }
  0x5b   : > { %p2271_p10 = pnand %p2270_p6, %p2264_p7 }
  0x5d   : > { %2274 = shalt.err (!%p2271_p10)
}
  0x5e   : > { %2073 = dma.hbm_to_vmem [thread:$0]  (!%p2535_p11), %s2531_s16, 128, %s2533_s17, %s234_s19  }
  0x5f   : > { %253 = sbr.rel (%p2438_p8) target bundleno = 1962 (0x7aa), region = 44  ;;  %s2567_s20 = sand.u32 (!%p2438_p8), 1, %s2337_s22  }
  0x60   : > { %s1876_s9 = sshll.u32 (!%p2438_p8), %s2567_s20, 3  ;;  %s256_s13 = scalar_lea.sflag (!%p2438_p8), [#allocation3], %s2567_s20 }
  0x61   : > { %s2573_s10 = scalar_lea.vmem (!%p2438_p8), [#allocation2], %s1876_s9  ;;  %p2843_p4 = scmp.ne.s32.totalorder (!%p2438_p8), %s2836_s27, 0 }
  0x66   : > { %2320 = dma.done.wait (%p2843_p4), %s256_s13, 128  }
  0x67   : > { %2322 = vsyncadd (%p2843_p4), %s256_s13, 4294967168  ;;  %p2844_p7 = scmp.eq.s32.totalorder %s2419_s25, 0 }
  0x69   : > { %2324 = dma.done.wait (%p2844_p7), [#allocation6], 4096   ;;  %p2845_p8 = pmov %p2844_p7 }
  0x6a   : > { %v297_v0 = vld [vmem:[%s2573_s10] sm:$0xff]  ;;  %v2132_v2 = vld [vmem:[#allocation5] ss:$12 sps:$4 sm:$0xff]   ;;  %v2354_v3 = vmov 0.0   ;;  %v2355_v25 = vmov 0   ;;  %vm2356_vm0 = vmmov 0   ;;  %v581_v53 = vlaneseq }
  0x6b   : > { %2326 = vsyncadd (%p2845_p8), [#allocation6], 4294963200  ;;  %300 = vadd.xlane.f32.xlu0 %v297_v0  ;;  %v2130_v1 = vld [vmem:[#allocation5 + $0x4] ss:$12 sps:$4 sm:$0xff]   ;;  %1963 = vmatprep.subr.bf16.mxu1 %v2354_v3  ;;  %v2133_v4 = vld [vmem:[#allocation5 + $0x8] ss:$12 sps:$4 sm:$0xff]  }
  0x6c   : > { %v2134_v5 = vld [vmem:[#allocation5 + $0x1c] ss:$12 sps:$4 sm:$0xff]   ;;  %487 = vmatprep.subr.bf16.mxu0 %v2130_v1  ;;  %1964 = vmatpush3.bf16.msra.mxu1 %v2133_v4  ;;  %v2136_v6 = vld [vmem:[#allocation5 + $0x18] ss:$12 sps:$4 sm:$0xff]   ;;  %v2137_v7 = vld [vmem:[#allocation5 + $0x20] ss:$12 sps:$4 sm:$0xff]  }
  0x6d   : > { %488 = vmatpush1.bf16.msra.mxu0 %v2132_v2  ;;  %1965 = vmatprep.subr.bf16.mxu1 %v2354_v3  ;;  %v2138_v8 = vld [vmem:[#allocation5 + $0x34] ss:$12 sps:$4 sm:$0xff]   ;;  %v2140_v13 = vld [vmem:[#allocation5 + $0x30] ss:$12 sps:$4 sm:$0xff]   ;;  %v2141_v14 = vld [vmem:[#allocation5 + $0x38] ss:$12 sps:$4 sm:$0xff]  }
  0x6e   : > { %489 = vmatprep.subr.bf16.mxu0 %v2134_v5  ;;  %v2142_v15 = vld [vmem:[#allocation5 + $0x4c] ss:$12 sps:$4 sm:$0xff]   ;;  %v2144_v16 = vld [vmem:[#allocation5 + $0x48] ss:$12 sps:$4 sm:$0xff]   ;;  %v2145_v17 = vld [vmem:[#allocation5 + $0x50] ss:$12 sps:$4 sm:$0xff]   ;;  %519 = vmatprep.mubr.bf16.mxu0 %v2355_v25 }
  0x6f   : > { %v2146_v18 = vld [vmem:[#allocation5 + $0x64] ss:$12 sps:$4 sm:$0xff]   ;;  %v2148_v19 = vld [vmem:[#allocation5 + $0x60] ss:$12 sps:$4 sm:$0xff]   ;;  %v2149_v20 = vld [vmem:[#allocation5 + $0x68] ss:$12 sps:$4 sm:$0xff]   ;;  %1979 = vmatprep.mubr.msk.bf16.mxu1 %vm2356_vm0, %v2354_v3 }
  0x70   : > { %1966 = vmatpush3.bf16.msra.mxu1 %v2137_v7  ;;  %v2150_v21 = vld [vmem:[#allocation5 + $0x7c] ss:$12 sps:$4 sm:$0xff]   ;;  %v2152_v22 = vld [vmem:[#allocation5 + $0x78] ss:$12 sps:$4 sm:$0xff]   ;;  %v2153_v23 = vld [vmem:[#allocation5 + $0x80] ss:$12 sps:$4 sm:$0xff]  }
  0x71   : > { %490 = vmatpush1.bf16.msra.mxu0 %v2136_v6  ;;  %1967 = vmatprep.subr.bf16.mxu1 %v2354_v3  ;;  %v2154_v24 = vld [vmem:[#allocation5 + $0x94] ss:$12 sps:$4 sm:$0xff]   ;;  %v2156_v26 = vld [vmem:[#allocation5 + $0x90] ss:$12 sps:$4 sm:$0xff]   ;;  %v2157_v27 = vld [vmem:[#allocation5 + $0x98] ss:$12 sps:$4 sm:$0xff]  }
  0x72   : > { %491 = vmatprep.subr.bf16.mxu0 %v2138_v8  ;;  %v2158_v28 = vld [vmem:[#allocation5 + $0xac] ss:$12 sps:$4 sm:$0xff]   ;;  %v2160_v29 = vld [vmem:[#allocation5 + $0xa8] ss:$12 sps:$4 sm:$0xff]   ;;  %v2161_v30 = vld [vmem:[#allocation5 + $0xb0] ss:$12 sps:$4 sm:$0xff]  }
  0x73   : > { %v1880_v35 = vld [vmem:[%s2827_s1] ss:$0 sm:$0xff]  ;;  %s2357_s18 = smov 32   ;;  %s2358_s19 = smov 96   ;;  %v2360_v51 = vmov 1983009808  }
  0x74   : > { %1968 = vmatpush3.bf16.msra.mxu1 %v2141_v14  ;;  %v1881_v37 = vld [vmem:[%s2828_s2] ss:$0 sm:$0xff]  ;;  %s2359_s14 = smov 64   ;;  %v579_v52 = vunpack.c.l.s4 %v2360_v51  ;;  %v2361_v54 = vmov 1934713408   ;;  %v582_v57 = vshrl.u32 %v581_v53, 7 }
  0x75   : > { %492 = vmatpush1.bf16.msra.mxu0 %v2140_v13  ;;  %1969 = vmatprep.subr.bf16.mxu1 %v2354_v3  ;;  %v596_v55 = vunpack.c.l.s4 %v2361_v54  ;;  %vm1075_vm1 = vcmask 261120   ;;  %vm1264_vm2 = vcmask 64512   ;;  %vm1316_vm3 = vcmask 1043456   ;;  %s1926_s7 = sshll.u32 %s2419_s25, 7  ;;  %s295_s30 = scalar_lea.vmem [#allocation8], %s1876_s9 }
  0x76   : > { %493 = vmatprep.subr.bf16.mxu0 %v2142_v15  ;;  %v580_v56 = vunpack.c.0.s8 %v579_v52  ;;  %vm1647_vm4 = vcmask 523264   ;;  %vm1649_vm5 = vcmask 785408   ;;  %s1779_s13 = sshll.u32 %s295_s30, 4  ;;  %s2782_s16 = scalar_lea.hbm %s2832_s6, %s1926_s7  ;;  %s2784_s13 = int_to_ptr.vmem [resolvable:$true] %s1779_s13 }
  0x77   : > { %v597_v58 = vunpack.c.0.s8 %v596_v55  ;;  %s1766_s25 = scalar_lea.sflag [#allocation4], %s2567_s20  ;;  %s2275_s9 = scalar_lea.vmem %s2784_s13, 128 }
  0x78   : > { %1970 = vmatpush3.bf16.msra.mxu1 %v2145_v17  ;;  %v2615_v59 = vsub.s32 %v580_v56, %v582_v57  ;;  %p2276_p11 = scmp.ne.s32.totalorder %s2784_s13, %s2275_s9  ;;  %p2846_p0 = scmp.ne.s32.totalorder %s2841_s12, 0 }
  0x79   : > { %494 = vmatpush1.bf16.msra.mxu0 %v2144_v16  ;;  %1971 = vmatprep.subr.bf16.mxu1 %v2354_v3  ;;  %v2618_v63 = vsub.s32 %v597_v58, %v582_v57 }
  0x7a   : > { %495 = vmatprep.subr.bf16.mxu0 %v2146_v18  ;;  %p2277_p1 = pnand %p2276_p11, %p2846_p0 }
  0x7c   : > { %1972 = vmatpush3.bf16.msra.mxu1 %v2149_v20  ;;  %p2278_p3 = pneg %p2277_p1 }
  0x7d   : > { %496 = vmatpush1.bf16.msra.mxu0 %v2148_v19  ;;  %1973 = vmatprep.subr.bf16.mxu1 %v2354_v3 }
  0x7e   : > { %497 = vmatprep.subr.bf16.mxu0 %v2150_v21 }
  0x80   : > { %1974 = vmatpush3.bf16.msra.mxu1 %v2153_v23 }
  0x81   : > { %498 = vmatpush1.bf16.msra.mxu0 %v2152_v22  ;;  %1975 = vmatprep.subr.bf16.mxu1 %v2354_v3 }
  0x82   : > { %499 = vmatprep.subr.bf16.mxu0 %v2154_v24 }
  0x84   : > { %1976 = vmatpush3.bf16.msra.mxu1 %v2157_v27 }
  0x85   : > { %500 = vmatpush1.bf16.msra.mxu0 %v2156_v26  ;;  %1977 = vmatprep.subr.bf16.mxu1 %v2354_v3 }
  0x86   : > { %501 = vmatprep.subr.bf16.mxu0 %v2158_v28 }
  0x88   : > { %1978 = vmatpush3.bf16.msra.mxu1 %v2161_v30 }
  0x89   : > { %502 = vmatpush1.bf16.msra.mxu0 %v2160_v29  ;;  %1983 = vmatprep.subr.bf16.mxu1 %v2354_v3 }
  0x8a   : > { %2007 = vmatprep.subr.bf16.mxu0 %v2354_v3 }
  0xf8   : > { %v301_v9 = vpop.xlane.xlu0 %300 }
  0xf9   : > { %v303_v10 = vmul.f32 0.0078125, %v301_v9 }
  0xfb   : > { %v304_v11 = vsub.f32 %v297_v0, %v303_v10 }
  0xfd   : > { %v305_v12 = vmul.f32 %v304_v11, %v304_v11 }
  0xff   : > { %306 = vadd.xlane.f32.xlu0 %v305_v12 }
 0x18c   : > { %v307_v31 = vpop.xlane.xlu0 %306 }
 0x18d   : > { %v308_v32 = vmul.f32 0.0078125, %v307_v31 }
 0x18f   : > { %v309_v33 = vadd.f32 1e-05, %v308_v32 }
 0x191   : > { %2170 = vrsqrt.f32 %v309_v33 }
 0x19b   : > { %v2171_v34 = vpop.eup %2170 }
 0x19c   : > { %v311_v36 = vmul.f32 %v2171_v34, %v304_v11 }
 0x19e   : > { %v318_v38 = vmul.f32 %v1880_v35, %v311_v36 }
 0x1a0   : > { %v325_v39 = vadd.f32 %v1881_v37, %v318_v38 }
 0x1a2   : > { %v326_v40 = vpack.c.bf16 %v325_v39, %v325_v39 }
 0x1a4   : > { %520 = vmatmul.mubr.bf16.vlgmr.msra.gmra.mrb[0].mxu0 %v326_v40  ;;  %1980 = vmatmul.mubr.bf16.vlgmr.msra.gmra.mrb[0].mxu1 %v326_v40 }
 0x1a5   : > { %1985 = vmatprep.mubr.msk.bf16.mxu1 %vm2356_vm0, %v2354_v3  ;;  %2009 = vmatprep.mubr.msk.bf16.mxu0 %vm2356_vm0, %v2354_v3 }
 0x277   : > { %v521_v41 = vpop.f32.mrb[0].mxu0  ;;  %v2607_v42 = vpop.f32.mrb[0].mxu1 }
 0x278   : > { %v523_v43 = vpop.f32.mrb[1].mxu0  ;;  %v1981_v44 = vpop.f32.mrb[1].mxu1  ;;  %v568_v50 = vpack.c.bf16 %v521_v41, %v521_v41 }
 0x279   : > { %v569_v45 = vpack.c.bf16 %v523_v43, %v523_v43  ;;  %v525_v46 = vpop.f32.mrb[2].mxu0  ;;  %v565_v47 = vpop.f32.mrb[2].mxu1 }
 0x27a   : > { %v526_v48 = vpop.f32.mrb[3].mxu0  ;;  %v1982_v49 = vpop.f32.mrb[3].mxu1  ;;  %v584_v19 = vrot.slane %v568_v50, %v2615_v59 }
 0x27b   : > { %744 = vrot.lane.b32.xlu0 %v569_v45, %s2357_s18  ;;  %740 = vrot.lane.b32.xlu1 %v569_v45, %s2358_s19  ;;  %v752_v8 = vrot.slane %v569_v45, %v2615_v59 }
 0x27f   : > { %742 = vrot.lane.b32.xlu1 %v569_v45, %s2359_s14 }
 0x283   : > { %572 = vrot.lane.b32.xlu1 %v568_v50, %s2358_s19 }
 0x287   : > { %574 = vrot.lane.b32.xlu1 %v568_v50, %s2359_s14 }
 0x28b   : > { %576 = vrot.lane.b32.xlu1 %v568_v50, %s2357_s18 }
 0x2ed   : > { %v745_v60 = vpop.permute.xlu0 %744  ;;  %v741_v61 = vpop.permute.xlu1 %740 }
 0x2ee   : > { %v794_v62 = vrot.slane %v745_v60, %v2615_v59  ;;  %v786_v0 = vrot.slane %v741_v61, %v2615_v59 }
 0x2f0   : > { %v795_v1 = vcombine.low %v786_v0, %v794_v62  ;;  %v796_v2 = vcombine.high %v786_v0, %v794_v62 }
 0x2f1   : > { %v743_v4 = vpop.permute.xlu1 %742 }
 0x2f2   : > { %v803_v5 = vrot.slane %v795_v1, %v2618_v63  ;;  %v810_v6 = vrot.slane %v796_v2, %v2618_v63  ;;  %v760_v7 = vrot.slane %v743_v4, %v2615_v59 }
 0x2f4   : > { %v811_v9 = vcombine.high %v803_v5, %v2355_v25  ;;  %v761_v10 = vcombine.low %v752_v8, %v760_v7  ;;  %v762_v11 = vcombine.high %v752_v8, %v760_v7  ;;  %v812_v13 = vcombine.high %v810_v6, %v2355_v25 }
 0x2f5   : > { %v573_v12 = vpop.permute.xlu1 %572  ;;  %v818_v16 = vshrl.u32 %v803_v5, 16  ;;  %v834_v18 = vshrl.u32 %v810_v6, 16 }
 0x2f6   : > { %v769_v14 = vrot.slane %v761_v10, %v2618_v63  ;;  %v776_v15 = vrot.slane %v762_v11, %v2618_v63  ;;  %v826_v17 = vshrl.u32 %v811_v9, 16  ;;  %v842_v26 = vshrl.u32 %v812_v13, 16 }
 0x2f7   : > { %v618_v46 = vrot.slane %v573_v12, %v2615_v59 }
 0x2f8   : > { %v777_v20 = vcombine.high %v769_v14, %v2355_v25  ;;  %v778_v21 = vcombine.high %v776_v15, %v2355_v25  ;;  %v815_v22 = vpack.i.b16 %v803_v5, %v769_v14  ;;  %v817_v23 = vshrl.u32 %v769_v14, 16 }
 0x2f9   : > { %v575_v24 = vpop.permute.xlu1 %574  ;;  %v831_v27 = vpack.i.b16 %v810_v6, %v776_v15  ;;  %v833_v28 = vshrl.u32 %v776_v15, 16 }
 0x2fa   : > { %v592_v29 = vrot.slane %v575_v24, %v2615_v59  ;;  %v819_v30 = vpack.i.b16 %v818_v16, %v817_v23  ;;  %v823_v31 = vpack.i.b16 %v811_v9, %v777_v20  ;;  %v825_v32 = vshrl.u32 %v777_v20, 16 }
 0x2fb   : > { %v839_v33 = vpack.i.b16 %v812_v13, %v778_v21  ;;  %v835_v34 = vpack.i.b16 %v834_v18, %v833_v28  ;;  %v841_v35 = vshrl.u32 %v778_v21, 16  ;;  %v845_v36 = vcombine.low %v815_v22, %v831_v27 }
 0x2fc   : > { %v593_v37 = vcombine.low %v584_v19, %v592_v29  ;;  %v827_v38 = vpack.i.b16 %v826_v17, %v825_v32  ;;  %v594_v40 = vcombine.high %v584_v19, %v592_v29 }
 0x2fd   : > { %v853_v39 = vcombine.low %v823_v31, %v839_v33  ;;  %v577_v41 = vpop.permute.xlu1 %576  ;;  %v843_v43 = vpack.i.b16 %v842_v26, %v841_v35  ;;  %v870_v44 = vcombine.low %v819_v30, %v835_v34  ;;  %v852_v50 = vrot.slane %v845_v36, %v2615_v59 }
 0x2fe   : > { %v601_v45 = vrot.slane %v593_v37, %v2618_v63  ;;  %v608_v47 = vrot.slane %v594_v40, %v2618_v63  ;;  %v626_v48 = vrot.slane %v577_v41, %v2615_v59 }
 0x2ff   : > { %v860_v49 = vrot.slane %v853_v39, %v2615_v59  ;;  %v878_v51 = vcombine.low %v827_v38, %v843_v43  ;;  %v877_v57 = vrot.slane %v870_v44, %v2615_v59 }
 0x300   : > { %v609_v52 = vcombine.high %v601_v45, %v2355_v25  ;;  %v610_v53 = vcombine.high %v608_v47, %v2355_v25  ;;  %v627_v54 = vcombine.low %v618_v46, %v626_v48  ;;  %v628_v55 = vcombine.high %v618_v46, %v626_v48 }
 0x301   : > { %v861_v56 = vcombine.low %v852_v50, %v860_v49  ;;  %v885_v58 = vrot.slane %v878_v51, %v2615_v59  ;;  %v649_v60 = vshrl.u32 %v601_v45, 16  ;;  %v665_v1 = vshrl.u32 %v608_v47, 16 }
 0x302   : > { %v635_v61 = vrot.slane %v627_v54, %v2618_v63  ;;  %v642_v62 = vrot.slane %v628_v55, %v2618_v63  ;;  %v657_v0 = vshrl.u32 %v609_v52, 16  ;;  %v673_v2 = vshrl.u32 %v610_v53, 16 }
 0x303   : > { %v886_v4 = vcombine.low %v877_v57, %v885_v58  ;;  %v868_v11 = vrot.slane %v861_v56, %v2618_v63 }
 0x304   : > { %v643_v5 = vcombine.high %v635_v61, %v2355_v25  ;;  %v644_v6 = vcombine.high %v642_v62, %v2355_v25  ;;  %v647_v7 = vpack.i.b16 %v635_v61, %v601_v45  ;;  %v650_v8 = vshrl.u32 %v635_v61, 16 }
 0x305   : > { %v663_v9 = vpack.i.b16 %v642_v62, %v608_v47  ;;  %v666_v10 = vshrl.u32 %v642_v62, 16  ;;  %v893_v12 = vrot.slane %v886_v4, %v2618_v63  ;;  %v898_v35 = vshrl.u32 %v868_v11, 16 }
 0x306   : > { %v651_v13 = vpack.i.b16 %v650_v8, %v649_v60  ;;  %v655_v14 = vpack.i.b16 %v643_v5, %v609_v52  ;;  %v658_v15 = vshrl.u32 %v643_v5, 16  ;;  %v671_v16 = vpack.i.b16 %v644_v6, %v610_v53 }
 0x307   : > { %v667_v17 = vpack.i.b16 %v666_v10, %v665_v1  ;;  %v674_v18 = vshrl.u32 %v644_v6, 16  ;;  %v677_v19 = vcombine.low %v647_v7, %v663_v9  ;;  %v897_v20 = vpack.i.b16 %v893_v12, %v868_v11 }
 0x308   : > { %v659_v21 = vpack.i.b16 %v658_v15, %v657_v0  ;;  %v685_v22 = vcombine.low %v655_v14, %v671_v16  ;;  %v899_v33 = vshrl.u32 %v893_v12, 16  ;;  %v894_v41 = vcombine.high %v893_v12, %v2355_v25 }
 0x309   : > { %v675_v23 = vpack.i.b16 %v674_v18, %v673_v2  ;;  %v702_v24 = vcombine.low %v651_v13, %v667_v17  ;;  %v1080_v26 = vsel %vm1075_vm1, %v897_v20, 0  ;;  %v684_v28 = vrot.slane %v677_v19, %v2615_v59 }
 0x30a   : > { %v692_v27 = vrot.slane %v685_v22, %v2615_v59  ;;  %1984 = vmatpush3.bf16.xpose.msra.mxu1 %v1080_v26  ;;  %v900_v38 = vpack.i.b16 %v899_v33, %v898_v35  ;;  %v869_v44 = vcombine.high %v868_v11, %v2355_v25  ;;  %v905_v49 = vshrl.u32 %v894_v41, 16 }
 0x30b   : > { %v710_v29 = vcombine.low %v659_v21, %v675_v23  ;;  %1989 = vmatprep.subr.bf16.mxu1 %v2354_v3  ;;  %v709_v31 = vrot.slane %v702_v24, %v2615_v59  ;;  %v570_v22 = vpack.c.bf16 %v2607_v42, %v2607_v42 }
 0x30c   : > { %v693_v30 = vcombine.low %v684_v28, %v692_v27  ;;  %v1126_v40 = vsel %vm1075_vm1, %v900_v38, 0  ;;  %v903_v46 = vpack.i.b16 %v894_v41, %v869_v44  ;;  %v904_v51 = vshrl.u32 %v869_v44, 16 }
 0x30d   : > { %v717_v32 = vrot.slane %v710_v29, %v2615_v59 }
 0x30e   : > { %v700_v36 = vrot.slane %v693_v30, %v2618_v63  ;;  %v1172_v48 = vsel %vm1075_vm1, %v903_v46, 0  ;;  %v906_v53 = vpack.i.b16 %v905_v49, %v904_v51  ;;  %v920_v46 = vrot.slane %v570_v22, %v2615_v59 }
 0x30f   : > { %v718_v34 = vcombine.low %v709_v31, %v717_v32 }
 0x310   : > { %v730_v45 = vshrl.u32 %v700_v36, 16  ;;  %v701_v52 = vcombine.high %v700_v36, %v2355_v25  ;;  %v1218_v55 = vsel %vm1075_vm1, %v906_v53, 0 }
 0x311   : > { %v725_v37 = vrot.slane %v718_v34, %v2618_v63 }
 0x312   : > { %v736_v57 = vshrl.u32 %v701_v52, 16 }
 0x313   : > { %v729_v39 = vpack.i.b16 %v725_v37, %v700_v36  ;;  %v731_v43 = vshrl.u32 %v725_v37, 16  ;;  %v726_v50 = vcombine.high %v725_v37, %v2355_v25 }
 0x315   : > { %1986 = vmatmul.mubr.msk.bf16.vlgmr.msra.gmra.mrb[4].mxu1 %vm1075_vm1, %v729_v39  ;;  %v732_v47 = vpack.i.b16 %v731_v43, %v730_v45  ;;  %v735_v54 = vpack.i.b16 %v726_v50, %v701_v52  ;;  %v737_v56 = vshrl.u32 %v726_v50, 16 }
 0x316   : > { %1990 = vmatpush3.bf16.xpose.msra.mxu1 %v1126_v40  ;;  %1991 = vmatprep.mubr.msk.bf16.mxu1 %vm2356_vm0, %v2354_v3 }
 0x317   : > { %1995 = vmatprep.subr.bf16.mxu1 %v2354_v3  ;;  %v738_v58 = vpack.i.b16 %v737_v56, %v736_v57 }
 0x31d   : > { %1992 = vmatmul.mubr.msk.bf16.vlgmr.msra.gmra.mrb[8].mxu1 %vm1075_vm1, %v732_v47 }
 0x31e   : > { %1996 = vmatpush3.bf16.xpose.msra.mxu1 %v1172_v48  ;;  %1997 = vmatprep.mubr.msk.bf16.mxu1 %vm2356_vm0, %v2354_v3 }
 0x31f   : > { %2001 = vmatprep.subr.bf16.mxu1 %v2354_v3 }
 0x325   : > { %1998 = vmatmul.mubr.msk.bf16.vlgmr.msra.gmra.mrb[12].mxu1 %vm1075_vm1, %v735_v54 }
 0x326   : > { %2002 = vmatpush3.bf16.xpose.msra.mxu1 %v1218_v55  ;;  %2003 = vmatprep.mubr.msk.bf16.mxu1 %vm2356_vm0, %v2354_v3 }
 0x327   : > { %2013 = vmatprep.subr.bf16.mxu1 %v2354_v3 }
 0x32d   : > { %2004 = vmatmul.mubr.msk.bf16.vlgmr.msra.gmra.mrb[16].mxu1 %vm1075_vm1, %v738_v58 }
 0x32e   : > { %2015 = vmatprep.mubr.msk.bf16.mxu1 %vm2356_vm0, %v2354_v3 }
 0x3e8   : > { %v1116_v60 = vpop.f32.mrb[4].mxu1 }
 0x3e9   : > { %v1260_v61 = vmul.f32 0.17677669, %v1116_v60  ;;  %v1987_v62 = vpop.f32.mrb[5].mxu1 }
 0x3ea   : > { %v1119_v0 = vpop.f32.mrb[6].mxu1 }
 0x3eb   : > { %v1988_v1 = vpop.f32.mrb[7].mxu1  ;;  %v1265_v2 = vsel %vm1264_vm2, %v1260_v61, -inf }
 0x3ec   : > { %1266 = vmax.xlane.f32.xlu1 %v1265_v2 }
 0x3f0   : > { %v1162_v4 = vpop.f32.mrb[8].mxu1 }
 0x3f1   : > { %v1261_v5 = vmul.f32 0.17677669, %v1162_v4  ;;  %v1993_v6 = vpop.f32.mrb[9].mxu1 }
 0x3f2   : > { %v1165_v7 = vpop.f32.mrb[10].mxu1 }
 0x3f3   : > { %v1994_v8 = vpop.f32.mrb[11].mxu1  ;;  %v1268_v9 = vsel %vm1264_vm2, %v1261_v5, -inf }
 0x3f4   : > { %1269 = vmax.xlane.f32.xlu0 %v1268_v9 }
 0x3f8   : > { %v1208_v10 = vpop.f32.mrb[12].mxu1 }
 0x3f9   : > { %v1262_v11 = vmul.f32 0.17677669, %v1208_v10  ;;  %v1999_v12 = vpop.f32.mrb[13].mxu1 }
 0x3fa   : > { %v1211_v13 = vpop.f32.mrb[14].mxu1 }
 0x3fb   : > { %v2000_v14 = vpop.f32.mrb[15].mxu1  ;;  %v1271_v15 = vsel %vm1264_vm2, %v1262_v11, -inf }
 0x3fc   : > { %1272 = vmax.xlane.f32.xlu1 %v1271_v15 }
 0x400   : > { %v1254_v16 = vpop.f32.mrb[16].mxu1 }
 0x401   : > { %v1263_v17 = vmul.f32 0.17677669, %v1254_v16  ;;  %v2005_v18 = vpop.f32.mrb[17].mxu1 }
 0x402   : > { %v1257_v19 = vpop.f32.mrb[18].mxu1 }
 0x403   : > { %v2006_v20 = vpop.f32.mrb[19].mxu1  ;;  %v1274_v21 = vsel %vm1264_vm2, %v1263_v17, -inf }
 0x404   : > { %1275 = vmax.xlane.f32.xlu1 %v1274_v21 }
 0x415   : > { %910 = vrot.lane.b32.xlu1 %v570_v22, %s2359_s14 }
 0x479   : > { %v1267_v23 = vpop.xlane.xlu1 %1266 }
 0x47a   : > { %v1277_v24 = vsub.f32 %v1260_v61, %v1267_v23 }
 0x47c   : > { %v1281_v26 = vmul.f32 1.442695, %v1277_v24 }
 0x47e   : > { %2172 = vpow2.f32 %v1281_v26 }
 0x481   : > { %v1270_v27 = vpop.xlane.xlu0 %1269 }
 0x482   : > { %v1278_v28 = vsub.f32 %v1261_v5, %v1270_v27 }
 0x484   : > { %v1283_v29 = vmul.f32 1.442695, %v1278_v28 }
 0x486   : > { %2174 = vpow2.f32 %v1283_v29 }
 0x488   : > { %v2686_v30 = vpop.eup %2172 }
 0x489   : > { %v1289_v31 = vsel %vm1264_vm2, %v2686_v30, 0.0  ;;  %v1273_v33 = vpop.xlane.xlu1 %1272 }
 0x48a   : > { %1290 = vadd.xlane.f32.xlu0 %v1289_v31  ;;  %v1279_v34 = vsub.f32 %v1262_v11, %v1273_v33 }
 0x48c   : > { %v1285_v35 = vmul.f32 1.442695, %v1279_v34 }
 0x48e   : > { %2176 = vpow2.f32 %v1285_v35 }
 0x490   : > { %v2690_v32 = vpop.eup %2174 }
 0x491   : > { %v1292_v42 = vsel %vm1264_vm2, %v2690_v32, 0.0  ;;  %v1276_v36 = vpop.xlane.xlu1 %1275 }
 0x492   : > { %1293 = vadd.xlane.f32.xlu1 %v1292_v42  ;;  %v1280_v37 = vsub.f32 %v1263_v17, %v1276_v36 }
 0x494   : > { %v1287_v38 = vmul.f32 1.442695, %v1280_v37 }
 0x495   : > { %v911_v44 = vpop.permute.xlu1 %910 }
 0x496   : > { %2178 = vpow2.f32 %v1287_v38  ;;  %v928_v45 = vrot.slane %v911_v44, %v2615_v59 }
 0x498   : > { %v2696_v39 = vpop.eup %2176  ;;  %v929_v48 = vcombine.low %v920_v46, %v928_v45  ;;  %v930_v49 = vcombine.high %v920_v46, %v928_v45 }
 0x499   : > { %v1295_v40 = vsel %vm1264_vm2, %v2696_v39, 0.0 }
 0x49a   : > { %v937_v51 = vrot.slane %v929_v48, %v2618_v63  ;;  %v944_v53 = vrot.slane %v930_v49, %v2618_v63 }
 0x49c   : > { %v945_v57 = vcombine.high %v937_v51, %v2355_v25  ;;  %v946_v61 = vcombine.high %v944_v53, %v2355_v25  ;;  %v985_v1 = vshrl.u32 %v937_v51, 16  ;;  %v1001_v4 = vshrl.u32 %v944_v53, 16 }
 0x49e   : > { %v993_v2 = vshrl.u32 %v945_v57, 16  ;;  %v1009_v9 = vshrl.u32 %v946_v61, 16 }
 0x4a0   : > { %908 = vrot.lane.b32.xlu0 %v570_v22, %s2358_s19  ;;  %v2700_v41 = vpop.eup %2178 }
 0x4a1   : > { %v1298_v43 = vsel %vm1264_vm2, %v2700_v41, 0.0 }
 0x4a3   : > { %912 = vrot.lane.b32.xlu1 %v570_v22, %s2357_s18 }
 0x4bf   : > { %1296 = vadd.xlane.f32.xlu0 %v1295_v40 }
 0x4c7   : > { %1299 = vadd.xlane.f32.xlu1 %v1298_v43 }
 0x517   : > { %v1291_v47 = vpop.xlane.xlu0 %1290 }
 0x518   : > { %2180 = vrcp.f32 %v1291_v47 }
 0x51b   : > { %v909_v52 = vpop.permute.xlu0 %908 }
 0x51c   : > { %v954_v55 = vrot.slane %v909_v52, %v2615_v59 }
 0x51f   : > { %v1294_v50 = vpop.xlane.xlu1 %1293 }
 0x520   : > { %2182 = vrcp.f32 %v1294_v50 }
 0x522   : > { %v2181_v42 = vpop.eup %2180 }
 0x523   : > { %v913_v54 = vpop.permute.xlu1 %912  ;;  %v1305_v37 = vmul.f32 %v2181_v42, %v2686_v30 }
 0x524   : > { %v962_v56 = vrot.slane %v913_v54, %v2615_v59 }
 0x525   : > { %v1309_v52 = vpack.c.bf16 %v1305_v37, %v1305_v37 }
 0x526   : > { %v963_v58 = vcombine.low %v954_v55, %v962_v56  ;;  %v964_v60 = vcombine.high %v954_v55, %v962_v56 }
 0x528   : > { %v971_v62 = vrot.slane %v963_v58, %v2618_v63  ;;  %v978_v0 = vrot.slane %v964_v60, %v2618_v63 }
 0x52a   : > { %v979_v5 = vcombine.high %v971_v62, %v2355_v25  ;;  %v980_v6 = vcombine.high %v978_v0, %v2355_v25  ;;  %v983_v7 = vpack.i.b16 %v971_v62, %v937_v51  ;;  %v986_v8 = vshrl.u32 %v971_v62, 16  ;;  %v2183_v35 = vpop.eup %2182 }
 0x52b   : > { %v999_v10 = vpack.i.b16 %v978_v0, %v944_v53  ;;  %v1002_v11 = vshrl.u32 %v978_v0, 16  ;;  %v1306_v45 = vmul.f32 %v2183_v35, %v2690_v32  ;;  %v2162_v0 = vld [vmem:[#allocation7] sm:$0xff]   ;;  %v2168_v35 = vld [vmem:[#allocation7 + $0x30] sm:$0xff]  }
 0x52c   : > { %v987_v12 = vpack.i.b16 %v986_v8, %v985_v1  ;;  %v991_v13 = vpack.i.b16 %v979_v5, %v945_v57  ;;  %v994_v14 = vshrl.u32 %v979_v5, 16  ;;  %v1007_v15 = vpack.i.b16 %v980_v6, %v946_v61  ;;  %v2163_v1 = vld [vmem:[#allocation7 + $0x8] sm:$0xff]  }
 0x52d   : > { %v1003_v16 = vpack.i.b16 %v1002_v11, %v1001_v4  ;;  %v1010_v17 = vshrl.u32 %v980_v6, 16  ;;  %v1013_v18 = vcombine.low %v983_v7, %v999_v10  ;;  %v1310_v53 = vpack.c.bf16 %v1306_v45, %v1306_v45  ;;  %v2166_v4 = vld [vmem:[#allocation7 + $0x20] sm:$0xff]  }
 0x52e   : > { %v995_v19 = vpack.i.b16 %v994_v14, %v993_v2  ;;  %v1021_v20 = vcombine.low %v991_v13, %v1007_v15  ;;  %v2164_v2 = vld [vmem:[#allocation7 + $0x10] sm:$0xff]  }
 0x52f   : > { %v1011_v21 = vpack.i.b16 %v1010_v17, %v1009_v9  ;;  %v1038_v22 = vcombine.low %v987_v12, %v1003_v16  ;;  %v1020_v23 = vrot.slane %v1013_v18, %v2615_v59 }
 0x530   : > { %v1028_v24 = vrot.slane %v1021_v20, %v2615_v59 }
 0x531   : > { %v1046_v26 = vcombine.low %v995_v19, %v1011_v21  ;;  %v1045_v28 = vrot.slane %v1038_v22, %v2615_v59 }
 0x532   : > { %v1029_v27 = vcombine.low %v1020_v23, %v1028_v24 }
 0x533   : > { %v1053_v29 = vrot.slane %v1046_v26, %v2615_v59 }
 0x534   : > { %v1036_v31 = vrot.slane %v1029_v27, %v2618_v63 }
 0x535   : > { %v1054_v33 = vcombine.low %v1045_v28, %v1053_v29 }
 0x536   : > { %v1037_v34 = vcombine.high %v1036_v31, %v2355_v25  ;;  %v1066_v40 = vshrl.u32 %v1036_v31, 16 }
 0x537   : > { %v1061_v36 = vrot.slane %v1054_v33, %v2618_v63 }
 0x538   : > { %v1072_v46 = vshrl.u32 %v1037_v34, 16 }
 0x539   : > { %v1065_v38 = vpack.i.b16 %v1061_v36, %v1036_v31  ;;  %v1067_v43 = vshrl.u32 %v1061_v36, 16  ;;  %v1062_v44 = vcombine.high %v1061_v36, %v2355_v25 }
 0x53b   : > { %v1318_v47 = vsel %vm1316_vm3, %v1065_v38, 0  ;;  %v1068_v48 = vpack.i.b16 %v1067_v43, %v1066_v40  ;;  %v1071_v49 = vpack.i.b16 %v1062_v44, %v1037_v34  ;;  %v1073_v50 = vshrl.u32 %v1062_v44, 16 }
 0x53c   : > { %2008 = vmatpush3.bf16.msra.mxu0 %v1318_v47 }
 0x53d   : > { %v1364_v51 = vsel %vm1316_vm3, %v1068_v48, 0  ;;  %2019 = vmatprep.subr.bf16.mxu0 %v2354_v3  ;;  %v1074_v30 = vpack.i.b16 %v1073_v50, %v1072_v46  ;;  %v1410_v25 = vsel %vm1316_vm3, %v1071_v49, 0 }
 0x53e   : > { %2014 = vmatpush3.bf16.msra.mxu1 %v1364_v51  ;;  %v2169_v51 = vld [vmem:[#allocation7 + $0x38] sm:$0xff]  }
 0x53f   : > { %2010 = vmatmul.mubr.msk.bf16.vlgmr.msra.gmra.mrb[4].mxu0 %vm1264_vm2, %v1309_v52  ;;  %2025 = vmatprep.subr.bf16.mxu1 %v2354_v3  ;;  %v1456_v32 = vsel %vm1316_vm3, %v1074_v30, 0 }
 0x540   : > { %2020 = vmatpush3.bf16.msra.mxu0 %v1410_v25  ;;  %2021 = vmatprep.mubr.msk.bf16.mxu0 %vm2356_vm0, %v2354_v3 }
 0x541   : > { %2016 = vmatmul.mubr.msk.bf16.vlgmr.msra.gmra.mrb[20].mxu1 %vm1264_vm2, %v1310_v53  ;;  %2031 = vmatprep.subr.bf16.mxu0 %v2354_v3 }
 0x542   : > { %2026 = vmatpush3.bf16.msra.mxu1 %v1456_v32  ;;  %2027 = vmatprep.mubr.msk.bf16.mxu1 %vm2356_vm0, %v2354_v3 }
 0x54c   : > { %v1297_v54 = vpop.xlane.xlu0 %1296 }
 0x54d   : > { %2184 = vrcp.f32 %v1297_v54 }
 0x554   : > { %v1300_v55 = vpop.xlane.xlu1 %1299 }
 0x555   : > { %2186 = vrcp.f32 %v1300_v55 }
 0x557   : > { %v2185_v56 = vpop.eup %2184 }
 0x558   : > { %v1307_v57 = vmul.f32 %v2185_v56, %v2696_v39  ;;  %v2165_v39 = vld [vmem:[#allocation7 + $0x18] sm:$0xff]  }
 0x55a   : > { %v1311_v58 = vpack.c.bf16 %v1307_v57, %v1307_v57 }
 0x55c   : > { %2022 = vmatmul.mubr.msk.bf16.vlgmr.msra.gmra.mrb[8].mxu0 %vm1264_vm2, %v1311_v58 }
 0x55d   : > { %2047 = vmatprep.mubr.msk.bf16.mxu0 %vm2356_vm0, %v2354_v3  ;;  %2032 = vmatpush3.bf16.msra.mxu0 %v2162_v0 }
 0x55e   : > { %2033 = vmatprep.subr.bf16.mxu0 %v2354_v3 }
 0x55f   : > { %v2187_v60 = vpop.eup %2186 }
 0x560   : > { %v1308_v61 = vmul.f32 %v2187_v60, %v2700_v41  ;;  %v2167_v41 = vld [vmem:[#allocation7 + $0x28] sm:$0xff]  }
 0x561   : > { %2034 = vmatpush3.bf16.msra.mxu0 %v2163_v1 }
 0x562   : > { %v1312_v62 = vpack.c.bf16 %v1308_v61, %v1308_v61  ;;  %2035 = vmatprep.subr.bf16.mxu0 %v2354_v3 }
 0x564   : > { %2028 = vmatmul.mubr.msk.bf16.vlgmr.msra.gmra.mrb[24].mxu1 %vm1264_vm2, %v1312_v62 }
 0x565   : > { %2036 = vmatpush3.bf16.msra.mxu0 %v2164_v2 }
 0x566   : > { %2037 = vmatprep.subr.bf16.mxu0 %v2354_v3 }
 0x569   : > { %2038 = vmatpush3.bf16.msra.mxu0 %v2165_v39  ;;  %v1916_v39 = vld [vmem:[%s2831_s5] ss:$0 sm:$0xff] }
 0x56a   : > { %2039 = vmatprep.subr.bf16.mxu0 %v2354_v3 }
 0x56d   : > { %2040 = vmatpush3.bf16.msra.mxu0 %v2166_v4 }
 0x56e   : > { %2041 = vmatprep.subr.bf16.mxu0 %v2354_v3 }
 0x571   : > { %2042 = vmatpush3.bf16.msra.mxu0 %v2167_v41 }
 0x572   : > { %2043 = vmatprep.subr.bf16.mxu0 %v2354_v3 }
 0x575   : > { %2044 = vmatpush3.bf16.msra.mxu0 %v2168_v35 }
 0x576   : > { %2045 = vmatprep.subr.bf16.mxu0 %v2354_v3 }
 0x579   : > { %2046 = vmatpush3.bf16.msra.mxu0 %v2169_v51 }
 0x612   : > { %v1354_v5 = vpop.f32.mrb[4].mxu0 }
 0x613   : > { %v2011_v6 = vpop.f32.mrb[5].mxu0 }
 0x614   : > { %v1357_v7 = vpop.f32.mrb[6].mxu0  ;;  %v1400_v8 = vpop.f32.mrb[20].mxu1 }
 0x615   : > { %v2012_v9 = vpop.f32.mrb[7].mxu0  ;;  %v2017_v10 = vpop.f32.mrb[21].mxu1  ;;  %v2188_v7 = vld [vmem:[%s2573_s10] sm:$0xff]  ;;  %s2362_s10 = smov [#allocation8]  }
 0x616   : > { %v1403_v11 = vpop.f32.mrb[22].mxu1  ;;  %s2279_s17 = sshll.u32 %s2362_s10, 4  ;;  %s2280_s17 = int_to_ptr.vmem [resolvable:$false] %s2279_s17 }
 0x617   : > { %v2018_v12 = vpop.f32.mrb[23].mxu1  ;;  %p2282_p5 = scmp.lt.s32.totalorder %s2784_s13, %s2280_s17 }
 0x62f   : > { %v1446_v13 = vpop.f32.mrb[8].mxu0 }
 0x630   : > { %v1498_v14 = vcombine.low %v1354_v5, %v1446_v13  ;;  %v1499_v15 = vcombine.high %v1354_v5, %v1446_v13  ;;  %v2023_v16 = vpop.f32.mrb[9].mxu0 }
 0x631   : > { %v1449_v17 = vpop.f32.mrb[10].mxu0 }
 0x632   : > { %v2024_v18 = vpop.f32.mrb[11].mxu0  ;;  %v1506_v24 = vrot.slane %v1498_v14, %v2615_v59  ;;  %v1513_v26 = vrot.slane %v1499_v15, %v2615_v59 }
 0x637   : > { %v1492_v19 = vpop.f32.mrb[24].mxu1 }
 0x638   : > { %v1514_v20 = vcombine.low %v1400_v8, %v1492_v19  ;;  %v1515_v21 = vcombine.high %v1400_v8, %v1492_v19  ;;  %v2029_v22 = vpop.f32.mrb[25].mxu1 }
 0x639   : > { %v1495_v23 = vpop.f32.mrb[26].mxu1 }
 0x63a   : > { %v1522_v27 = vrot.slane %v1514_v20, %v2615_v59  ;;  %v1529_v28 = vrot.slane %v1515_v21, %v2615_v59  ;;  %v2030_v29 = vpop.f32.mrb[27].mxu1 }
 0x63c   : > { %v1530_v31 = vcombine.low %v1506_v24, %v1522_v27  ;;  %v1531_v42 = vcombine.high %v1506_v24, %v1522_v27  ;;  %v1546_v33 = vcombine.low %v1513_v26, %v1529_v28  ;;  %v1547_v34 = vcombine.high %v1513_v26, %v1529_v28 }
 0x63e   : > { %v1538_v36 = vrot.slane %v1530_v31, %v2618_v63  ;;  %v1545_v37 = vrot.slane %v1531_v42, %v2618_v63  ;;  %v1554_v38 = vrot.slane %v1546_v33, %v2618_v63  ;;  %v1561_v40 = vrot.slane %v1547_v34, %v2618_v63 }
 0x640   : > { %v1566_v43 = vcombine.low %v1538_v36, %v1545_v37  ;;  %v1914_v44 = vcombine.high %v1538_v36, %v1545_v37  ;;  %v1582_v45 = vcombine.low %v1554_v38, %v1561_v40  ;;  %v1915_v46 = vcombine.high %v1554_v38, %v1561_v40 }
 0x642   : > { %v1573_v47 = vrot.slane %v1566_v43, %v2615_v59  ;;  %v1581_v48 = vrot.slane %v1914_v44, %v2615_v59  ;;  %v1589_v49 = vrot.slane %v1582_v45, %v2615_v59  ;;  %v1597_v50 = vrot.slane %v1915_v46, %v2615_v59 }
 0x644   : > { %v1599_v52 = vcombine.high %v1573_v47, %v1581_v48  ;;  %v1615_v30 = vcombine.high %v1589_v49, %v1597_v50  ;;  %v1598_v25 = vcombine.low %v1573_v47, %v1581_v48  ;;  %v1614_v53 = vcombine.low %v1589_v49, %v1597_v50 }
 0x646   : > { %v1613_v32 = vrot.slane %v1599_v52, %v2618_v63  ;;  %v1629_v54 = vrot.slane %v1615_v30, %v2618_v63  ;;  %v1606_v3 = vrot.slane %v1598_v25, %v2618_v63  ;;  %v1622_v55 = vrot.slane %v1614_v53, %v2618_v63 }
 0x648   : > { %v1632_v56 = vcombine.low %v1613_v32, %v1629_v54  ;;  %v1631_v57 = vcombine.high %v1606_v3, %v1622_v55  ;;  %v1633_v58 = vcombine.high %v1613_v32, %v1629_v54  ;;  %v1630_v60 = vcombine.low %v1606_v3, %v1622_v55 }
 0x64a   : > { %1639 = vrot.lane.b32.xlu1 %v1632_v56, %s2359_s14  ;;  %1635 = vrot.lane.b32.xlu0 %v1631_v57, %s2357_s18  ;;  %s2281_s18 = scalar_lea.vmem %s2280_s17, 256 }
 0x64b   : > { %p2283_p9 = scmp.lt.s32.totalorder %s2281_s18, %s2275_s9 }
 0x64d   : > { %p2284_p12 = por %p2283_p9, %p2282_p5 }
 0x64e   : > { %1643 = vrot.lane.b32.xlu0 %v1633_v58, %s2358_s19 }
 0x64f   : > { %p2285_p2 = pnand %p2284_p12, %p2278_p3 }
 0x6bc   : > { %v1636_v59 = vpop.permute.xlu0 %1635  ;;  %v1640_v61 = vpop.permute.xlu1 %1639 }
 0x6bd   : > { %v1646_v62 = vsel %vm1075_vm1, %v1630_v60, %v1636_v59 }
 0x6be   : > { %v1648_v0 = vsel %vm1647_vm4, %v1646_v62, %v1640_v61 }
 0x6c0   : > { %v1644_v63 = vpop.permute.xlu0 %1643 }
 0x6c1   : > { %v1650_v1 = vsel %vm1649_vm5, %v1648_v0, %v1644_v63 }
 0x6c2   : > { %v1651_v2 = vpack.c.bf16 %v1650_v1, %v1650_v1 }
 0x6c4   : > { %2048 = vmatmul.mubr.bf16.vlgmr.msra.gmra.mrb[12].mxu0 %v1651_v2 }
 0x797   : > { %v1757_v4 = vpop.f32.mrb[12].mxu0 }
 0x798   : > { %v1758_v41 = vadd.f32 %v1916_v39, %v1757_v4  ;;  %v2049_v5 = vpop.f32.mrb[13].mxu0 }
 0x799   : > { %v1760_v6 = vpop.f32.mrb[14].mxu0 }
 0x79a   : > { %v1763_v8 = vadd.f32 %v2188_v7, %v1758_v41  ;;  %v2050_v9 = vpop.f32.mrb[15].mxu0 }
 0x79c   : > { %1764 = vst [vmem:[%s295_s30] sm:$0xff] %v1763_v8 }
 0x79d   : > { %2288 = shalt.err (!%p2285_p2)
}
 0x79e   : > { %s2289_s20 = scalar_lea.hbm %s2782_s16, 128  ;;  %s2293_s8 = scalar_lea.hbm %s2832_s6, 256 }
 0x79f   : > { %p2290_p13 = scmp.ne.s32.totalorder %s2782_s16, %s2289_s20  ;;  %p2294_p4 = scmp.lt.u32.totalorder %s2782_s16, %s2832_s6 }
 0x7a0   : > { %p2295_p7 = scmp.lt.u32.totalorder %s2293_s8, %s2289_s20  ;;  %p2297_p11 = scmp.lt.u32.totalorder %s2289_s20, %s2782_s16 }
 0x7a1   : > { %p2291_p6 = pnand %p2290_p13, %p2846_p0 }
 0x7a2   : > { %p2296_p8 = por %p2295_p7, %p2294_p4 }
 0x7a3   : > { %p2292_p10 = pneg %p2291_p6 }
 0x7a4   : > { %p2298_p1 = por %p2297_p11, %p2296_p8 }
 0x7a6   : > { %p2299_p3 = pnand %p2298_p1, %p2292_p10 }
 0x7a8   : > { %2302 = shalt.err (!%p2299_p3)
}
 0x7a9   : > { %2061 = dma.vmem_to_hbm [thread:$0]  (%p2846_p0), %s2784_s13, 128, %s2782_s16, %s1766_s25  }
 0x7aa PF: > { %s1791_s30 = sand.u32 1, %s2333_s21   ;;  %p2847_p5 = scmp.ne.s32.totalorder %s2837_s28, 0 }
 0x7ab   : > { %p2848_p9 = scmp.ge.s32.totalorder %s2345_s24, 2  ;;  %s1792_s27 = scalar_lea.sflag [#allocation4], %s1791_s30 }
 0x7ad   : > { %p2075_p12 = pnand %p2848_p9, %p2847_p5 }
 0x7af   : > { %2328 = dma.done.wait (!%p2075_p12), %s1792_s27, 128  }
 0x7b0   : > { %2330 = vsyncadd (!%p2075_p12), %s1792_s27, 4294967168  ;;  %p20_p2 = scmp.ge.s32.totalorder %s2508_s26, 4   ;;  %s2849_s21 = smov %s2337_s22 }
 0x7b1   : > { %s2850_s22 = smov %s2341_s23  ;;  %s2851_s23 = smov %s2517_s11 }
 0x7b2   : > { %s2852_s24 = smov %s2508_s26  ;;  %22 = sbr.rel (!%p20_p2) target bundleno = 6 (0x6), region = 97 }
 0x7b9   :  { %1797 = vsyncpa [#allocation3], 1 }
 0x7ba   :  { %1799 = vsyncpa [#allocation3 + $0x1], 1 }
 0x7bb   :  { %1800 = vsyncpa [#allocation6], 1 }
 0x7bc   :  { %1801 = vsyncpa [#allocation4], 1 }
 0x7bd   :  { %1803 = vsyncpa [#allocation4 + $0x1], 1 }

</bundles_post_ra>
